<compile_context>
chip_gen: v7x
topology: tpu7x:2x2x1
jax: 0.10.0
libtpu: 0.0.40
codegen_flags: <defaults>
</compile_context>

<pallas_src>
import functools

import jax
import jax.numpy as jnp
from jax.experimental import pallas as pl
from jax.experimental.pallas import tpu as pltpu


def _round_up(x, m):
    return ((x + m - 1) // m) * m


def _pad_to(x, shape):
    return jnp.pad(x, [(0, t - s) for s, t in zip(x.shape, shape)])


def _largest_divisor_leq(n, k):
    k = max(1, min(n, k))
    for d in range(k, 0, -1):
        if n % d == 0:
            return d
    return 1


def _attention_kernel(x_ref, enc_ref, wq_ref, bq_ref, woc_ref, woo_ref, bo_ref,
                      o_ref, attn_ref, *, n_keys, compute_dtype):
    bb, tq, e_pad = x_ref.shape
    _, tk, d_pad = enc_ref.shape

    x = x_ref[...]            # (bb, tq, E_pad)  compute_dtype
    enc = enc_ref[...]        # (bb, tk, D_pad)  compute_dtype

    # linear_query over the flattened batch block.  The reshape is tile-aligned
    # (tq is a multiple of the sublane pack, E_pad/D_pad multiples of 128), so
    # it is a free relayout, not a VMEM copy.
    x2 = x.reshape(bb * tq, e_pad)
    q = jnp.dot(x2, wq_ref[...], preferred_element_type=jnp.float32) + bq_ref[...]

    # attn logits: contract the feature dim of both operands (batched MXU matmul,
    # no in-kernel enc transpose).
    # TODO(synk): verify with pl.lower_as_mlir that no XLU transpose of `enc` is
    # inserted here; if it is, feed a pre-transposed (B, D_pad, Tk_pad) copy.
    scores = jnp.einsum("bqd,bkd->bqk",
                        q.reshape(bb, tq, d_pad).astype(compute_dtype), enc,
                        preferred_element_type=jnp.float32)        # (bb, tq, tk) f32

    # Mask padded key columns, then softmax over the key axis (dim=2 in the
    # PyTorch reference), all in f32.
    key_ids = jax.lax.broadcasted_iota(jnp.int32, scores.shape, 2)
    scores = jnp.where(key_ids < n_keys, scores, -1e30)
    m = jnp.max(scores, axis=-1, keepdims=True)
    p = jnp.exp(scores - m)
    attn = p * pl.reciprocal(jnp.sum(p, axis=-1, keepdims=True), approx=True)
    attn_ref[...] = attn.astype(attn_ref.dtype)

    # context: batched (bb, tq, tk) @ (bb, tk, D_pad).
    # TODO(synk): for production Tq*Tk, tile the key axis with an online-softmax
    # accumulator instead of materializing full f32 scores/p/attn temporaries.
    ctx = jnp.einsum("bqk,bkd->bqd", attn.astype(compute_dtype), enc,
                     preferred_element_type=jnp.float32)           # (bb, tq, D_pad)

    # linear_out on cat([context, output], -1), split into two matmuls, then tanh.
    ctx2 = ctx.reshape(bb * tq, d_pad).astype(compute_dtype)
    out = jnp.tanh(
        jnp.dot(ctx2, woc_ref[...], preferred_element_type=jnp.float32)
        + jnp.dot(x2, woo_ref[...], preferred_element_type=jnp.float32)
        + bo_ref[...])
    o_ref[...] = out.reshape(bb, tq, d_pad).astype(o_ref.dtype)


def attention_forward(output, encoder_output, params, *, batch_block=None,
                      use_bf16=True, attn_dtype=jnp.float32):
    """output: (B, Tq, E), encoder_output: (B, Tk, D).  Returns (out, attn)."""
    B, Tq, E = output.shape
    _, Tk, D = encoder_output.shape

    cdt = jnp.bfloat16 if use_bf16 else jnp.float32
    cdt_size = 2 if use_bf16 else 4

    # Padding: last dims -> multiple of 128 (lane-dense loads/stores);
    # Tq -> multiple of 16 (bf16 sublane packing + tile-aligned reshapes).
    Tq_p, Tk_p = _round_up(Tq, 16), _round_up(Tk, 128)
    E_p, D_p = _round_up(E, 128), _round_up(D, 128)

    x_p = _pad_to(output, (B, Tq_p, E_p)).astype(cdt)
    enc_p = _pad_to(encoder_output, (B, Tk_p, D_p)).astype(cdt)

    wq_t = _pad_to(params["wq"].T, (E_p, D_p)).astype(cdt)          # (E, D) -> (E_p, D_p)
    bq = _pad_to(params["bq"].reshape(1, D), (1, D_p)).astype(jnp.float32)
    wo = params["wo"]                                               # (D, D+E); cat = [context(D), output(E)]
    woc_t = _pad_to(wo[:, :D].T, (D_p, D_p)).astype(cdt)
    woo_t = _pad_to(wo[:, D:].T, (E_p, D_p)).astype(cdt)
    bo = _pad_to(params["bo"].reshape(1, D), (1, D_p)).astype(jnp.float32)

    # Per-batch-element bytes moved in one grid step (inputs + outputs).
    attn_size = jnp.dtype(attn_dtype).itemsize
    per_b = (cdt_size * (Tq_p * E_p + Tk_p * D_p)
             + 4 * Tq_p * D_p + attn_size * Tq_p * Tk_p)
    if batch_block is None:
        # Target ~2 MiB per step so the BlockSpec pipeline overlaps DMA/compute
        # at production shapes; collapses to a single step at toy shapes.
        # On v7x pass batch_block=B//2 to shard across both TensorCores.
        batch_block = _largest_divisor_leq(B, max(1, (2 << 20) // per_b))
    assert B % batch_block == 0, "batch_block must divide B"
    nb = B // batch_block

    w_bytes = cdt_size * (2 * E_p * D_p + D_p * D_p) + 4 * 2 * D_p
    tmp_bytes = 4 * batch_block * Tq_p * (3 * Tk_p + 3 * D_p)        # f32 temporaries
    vmem_limit = int(min(64 << 20,                                   # v7x per-TC VMEM
                         max(32 << 20,
                             2 * (2 * batch_block * per_b + w_bytes) + tmp_bytes)))

    full = lambda shape: pl.BlockSpec(shape, lambda b: tuple(0 for _ in shape))

    flops = 2 * B * Tq_p * (2 * E_p * D_p + 2 * Tk_p * D_p + D_p * D_p)
    transcendentals = B * Tq_p * (Tk_p + D_p + 1)                    # exp + tanh + recip
    bytes_accessed = B * per_b + w_bytes

    kernel = functools.partial(_attention_kernel, n_keys=Tk, compute_dtype=cdt)

    o_p, attn_p = pl.pallas_call(
        kernel,
        out_shape=(
            jax.ShapeDtypeStruct((B, Tq_p, D_p), jnp.float32),
            jax.ShapeDtypeStruct((B, Tq_p, Tk_p), attn_dtype),
        ),
        grid_spec=pltpu.PrefetchScalarGridSpec(
            num_scalar_prefetch=0,
            grid=(nb,),
            in_specs=[
                pl.BlockSpec((batch_block, Tq_p, E_p), lambda b: (b, 0, 0)),   # output
                pl.BlockSpec((batch_block, Tk_p, D_p), lambda b: (b, 0, 0)),   # encoder_output
                # Weights/biases: constant index_map -> resident across grid steps.
                full((E_p, D_p)),                                              # wq^T
                full((1, D_p)),                                                # bq
                full((D_p, D_p)),                                              # wo[:, :D]^T (context part)
                full((E_p, D_p)),                                              # wo[:, D:]^T (output part)
                full((1, D_p)),                                                # bo
            ],
            out_specs=[
                pl.BlockSpec((batch_block, Tq_p, D_p), lambda b: (b, 0, 0)),
                pl.BlockSpec((batch_block, Tq_p, Tk_p), lambda b: (b, 0, 0)),
            ],
        ),
        compiler_params=pltpu.CompilerParams(
            dimension_semantics=("parallel",),
            vmem_limit_bytes=vmem_limit),
        cost_estimate=pl.CostEstimate(
            flops=flops,
            transcendentals=transcendentals,
            bytes_accessed=bytes_accessed),
    )(x_p, enc_p, wq_t, bq, woc_t, woo_t, bo)

    # Slice the padding off outside the kernel (cheap XLA slices).
    return o_p[:, :Tq, :D], attn_p[:, :Tq, :Tk]


def attention_reference(output, encoder_output, params):
    """Pure-JAX reference mirroring the PyTorch forward exactly."""
    q = output @ params["wq"].T + params["bq"]                      # linear_query
    attn = jnp.einsum("bqd,bkd->bqk", q, encoder_output)            # bmm with transpose(1,2)
    attn = jax.nn.softmax(attn, axis=2)
    context = jnp.einsum("bqk,bkd->bqd", attn, encoder_output)      # bmm
    cat = jnp.concatenate([context, output], axis=2)
    out = jnp.tanh(cat @ params["wo"].T + params["bo"])             # linear_out
    return out, attn


if __name__ == "__main__":
    enc_hidden_size = 32   # E
    dec_hidden_size = 16   # D
    B, Tq, Tk = 2, 8, 8

    key = jax.random.PRNGKey(0)
    k1, k2, k3, k4, k5, k6 = jax.random.split(key, 6)

    # Deterministic synthetic parameters (same shapes as the nn.Linear layers).
    params = {
        "wq": jax.random.normal(k1, (dec_hidden_size, enc_hidden_size), jnp.float32) * 0.1,
        "bq": jax.random.normal(k2, (dec_hidden_size,), jnp.float32) * 0.1,
        "wo": jax.random.normal(k3, (dec_hidden_size,
                                     enc_hidden_size + dec_hidden_size), jnp.float32) * 0.1,
        "bo": jax.random.normal(k4, (dec_hidden_size,), jnp.float32) * 0.1,
    }

    output = jax.random.normal(k5, (B, Tq, enc_hidden_size), jnp.float32)
    encoder_output = jax.random.normal(k6, (B, Tq if False else Tk, dec_hidden_size), jnp.float32)
    time_lag = None  # unused by the forward pass

    ref_out, ref_attn = attention_reference(output, encoder_output, params)

    # Default path: bf16 MXU operands, collapsed batch (single grid step).
    out, attn = attention_forward(output, encoder_output, params)
    out = jax.block_until_ready(out)
    attn = jax.block_until_ready(attn)
    assert out.shape == (B, Tq, dec_hidden_size)
    assert attn.shape == (B, Tq, Tk)
    assert jnp.allclose(out, ref_out, atol=5e-2, rtol=5e-2)
    assert jnp.allclose(attn, ref_attn, atol=5e-2, rtol=5e-2)

    # f32 path with a multi-step grid (exercises pipelining + resident weights).
    out2, attn2 = attention_forward(output, encoder_output, params,
                                    batch_block=1, use_bf16=False)
    out2 = jax.block_until_ready(out2)
    attn2 = jax.block_until_ready(attn2)
    assert jnp.allclose(out2, ref_out, atol=5e-3, rtol=5e-3)
    assert jnp.allclose(attn2, ref_attn, atol=5e-3, rtol=5e-3)

    print("KERNEL_OK")
</pallas_src>

<mosaic_0001>
module attributes {stable_mosaic.version = 11 : i64} {
  func.func @_attention_kernel(%arg0: i32, %arg1: memref<2x16x128xbf16, #tpu.memory_space<vmem>>, %arg2: memref<2x128x128xbf16, #tpu.memory_space<vmem>>, %arg3: memref<128x128xbf16, #tpu.memory_space<vmem>>, %arg4: memref<1x128xf32, #tpu.memory_space<vmem>>, %arg5: memref<128x128xbf16, #tpu.memory_space<vmem>>, %arg6: memref<128x128xbf16, #tpu.memory_space<vmem>>, %arg7: memref<1x128xf32, #tpu.memory_space<vmem>>, %arg8: memref<2x16x128xf32, #tpu.memory_space<vmem>>, %arg9: memref<2x16x128xf32, #tpu.memory_space<vmem>>) attributes {dimension_semantics = [#tpu.dimension_semantics<parallel>], iteration_bounds = array<i64: 1>, scalar_prefetch = 0 : i64, scratch_operands = 0 : i64, tpu.core_type = #tpu.core_type<tc>, window_params = [{transform_indices = @transform_0, window_bounds = array<i64: 2, 16, 128>}, {transform_indices = @transform_1, window_bounds = array<i64: 2, 128, 128>}, {pipeline_mode = #tpu.pipeline_mode<synchronous>, transform_indices = @transform_2, window_bounds = array<i64: 128, 128>}, {pipeline_mode = #tpu.pipeline_mode<synchronous>, transform_indices = @transform_3, window_bounds = array<i64: 1, 128>}, {pipeline_mode = #tpu.pipeline_mode<synchronous>, transform_indices = @transform_4, window_bounds = array<i64: 128, 128>}, {pipeline_mode = #tpu.pipeline_mode<synchronous>, transform_indices = @transform_5, window_bounds = array<i64: 128, 128>}, {pipeline_mode = #tpu.pipeline_mode<synchronous>, transform_indices = @transform_6, window_bounds = array<i64: 1, 128>}, {transform_indices = @transform_7, window_bounds = array<i64: 2, 16, 128>}, {transform_indices = @transform_8, window_bounds = array<i64: 2, 16, 128>}]} {
    %c0 = arith.constant 0 : index
    %c0_0 = arith.constant 0 : index
    %c0_1 = arith.constant 0 : index
    %0 = vector.load %arg1[%c0, %c0_0, %c0_1] : memref<2x16x128xbf16, #tpu.memory_space<vmem>>, vector<2x16x128xbf16>
    %c0_2 = arith.constant 0 : index
    %c0_3 = arith.constant 0 : index
    %c0_4 = arith.constant 0 : index
    %1 = vector.load %arg2[%c0_2, %c0_3, %c0_4] : memref<2x128x128xbf16, #tpu.memory_space<vmem>>, vector<2x128x128xbf16>
    %2 = vector.shape_cast %0 : vector<2x16x128xbf16> to vector<32x128xbf16>
    %c0_5 = arith.constant 0 : index
    %c0_6 = arith.constant 0 : index
    %3 = vector.load %arg3[%c0_5, %c0_6] : memref<128x128xbf16, #tpu.memory_space<vmem>>, vector<128x128xbf16>
    %cst = arith.constant dense<0.000000e+00> : vector<32x128xf32>
    %4 = tpu.matmul %2, %3, %cst {dimension_numbers = #tpu.dot_dimension_numbers<[1], [0], [0], [1], [0, 0, 1, 1], [], []>} : vector<32x128xbf16>, vector<128x128xbf16>, vector<32x128xf32> -> vector<32x128xf32>
    %c0_7 = arith.constant 0 : index
    %c0_8 = arith.constant 0 : index
    %5 = vector.load %arg4[%c0_7, %c0_8] : memref<1x128xf32, #tpu.memory_space<vmem>>, vector<1x128xf32>
    %6 = vector.broadcast %5 : vector<1x128xf32> to vector<32x128xf32>
    %7 = arith.addf %4, %6 : vector<32x128xf32>
    %8 = vector.shape_cast %7 : vector<32x128xf32> to vector<2x16x128xf32>
    %9 = arith.truncf %8 : vector<2x16x128xf32> to vector<2x16x128xbf16>
    "tpu.trace_start"() <{level = 10 : i32, message = "bqd,bkd->bqk"}> : () -> ()
    %cst_9 = arith.constant dense<0.000000e+00> : vector<2x16x128xf32>
    %10 = tpu.matmul %9, %1, %cst_9 {dimension_numbers = #tpu.dot_dimension_numbers<[2], [2], [1], [1], [0, 0, 0, 1, 1, 1], [0], [0]>} : vector<2x16x128xbf16>, vector<2x128x128xbf16>, vector<2x16x128xf32> -> vector<2x16x128xf32>
    "tpu.trace_stop"() : () -> ()
    %11 = tpu.iota {dimensions = array<i32: 2>} : vector<2x16x128xi32>
    %c8_i32 = arith.constant 8 : i32
    %12 = vector.broadcast %c8_i32 : i32 to vector<2x16x128xi32>
    %13 = arith.cmpi slt, %11, %12 : vector<2x16x128xi32>
    %cst_10 = arith.constant -1.000000e+30 : f32
    %14 = vector.broadcast %cst_10 : f32 to vector<2x16x128xf32>
    %15 = arith.select %13, %10, %14 : vector<2x16x128xi1>, vector<2x16x128xf32>
    %cst_11 = arith.constant dense<0xFF800000> : vector<2x16xf32>
    %16 = vector.multi_reduction <maximumf>, %15, %cst_11 [2] : vector<2x16x128xf32> to vector<2x16xf32>
    %17 = vector.shape_cast %16 : vector<2x16xf32> to vector<2x16x1xf32>
    %18 = vector.broadcast %17 : vector<2x16x1xf32> to vector<2x16x128xf32>
    %19 = arith.subf %15, %18 : vector<2x16x128xf32>
    %20 = math.exp %19 : vector<2x16x128xf32>
    %cst_12 = arith.constant dense<0.000000e+00> : vector<2x16xf32>
    %21 = vector.multi_reduction <add>, %20, %cst_12 [2] : vector<2x16x128xf32> to vector<2x16xf32>
    %22 = vector.shape_cast %21 : vector<2x16xf32> to vector<2x16x1xf32>
    %23 = tpu.reciprocal %22 {approx = true} : vector<2x16x1xf32> -> vector<2x16x1xf32>
    %24 = vector.broadcast %23 : vector<2x16x1xf32> to vector<2x16x128xf32>
    %25 = arith.mulf %20, %24 : vector<2x16x128xf32>
    %c0_13 = arith.constant 0 : index
    %c0_14 = arith.constant 0 : index
    %c0_15 = arith.constant 0 : index
    %26 = vector.load %arg9[%c0_13, %c0_14, %c0_15] : memref<2x16x128xf32, #tpu.memory_space<vmem>>, vector<2x16x128xf32>
    tpu.vector_store %arg9[%c0_13, %c0_14, %c0_15], %25 {strides = array<i32>} : memref<2x16x128xf32, #tpu.memory_space<vmem>>, vector<2x16x128xf32>,
    %27 = arith.truncf %25 : vector<2x16x128xf32> to vector<2x16x128xbf16>
    "tpu.trace_start"() <{level = 10 : i32, message = "bqk,bkd->bqd"}> : () -> ()
    %cst_16 = arith.constant dense<0.000000e+00> : vector<2x16x128xf32>
    %28 = tpu.matmul %27, %1, %cst_16 {dimension_numbers = #tpu.dot_dimension_numbers<[2], [1], [1], [2], [0, 0, 0, 1, 1, 2], [0], [0]>} : vector<2x16x128xbf16>, vector<2x128x128xbf16>, vector<2x16x128xf32> -> vector<2x16x128xf32>
    "tpu.trace_stop"() : () -> ()
    %29 = vector.shape_cast %28 : vector<2x16x128xf32> to vector<32x128xf32>
    %30 = arith.truncf %29 : vector<32x128xf32> to vector<32x128xbf16>
    %c0_17 = arith.constant 0 : index
    %c0_18 = arith.constant 0 : index
    %31 = vector.load %arg5[%c0_17, %c0_18] : memref<128x128xbf16, #tpu.memory_space<vmem>>, vector<128x128xbf16>
    %cst_19 = arith.constant dense<0.000000e+00> : vector<32x128xf32>
    %32 = tpu.matmul %30, %31, %cst_19 {dimension_numbers = #tpu.dot_dimension_numbers<[1], [0], [0], [1], [0, 0, 1, 1], [], []>} : vector<32x128xbf16>, vector<128x128xbf16>, vector<32x128xf32> -> vector<32x128xf32>
    %c0_20 = arith.constant 0 : index
    %c0_21 = arith.constant 0 : index
    %33 = vector.load %arg6[%c0_20, %c0_21] : memref<128x128xbf16, #tpu.memory_space<vmem>>, vector<128x128xbf16>
    %cst_22 = arith.constant dense<0.000000e+00> : vector<32x128xf32>
    %34 = tpu.matmul %2, %33, %cst_22 {dimension_numbers = #tpu.dot_dimension_numbers<[1], [0], [0], [1], [0, 0, 1, 1], [], []>} : vector<32x128xbf16>, vector<128x128xbf16>, vector<32x128xf32> -> vector<32x128xf32>
    %35 = arith.addf %32, %34 : vector<32x128xf32>
    %c0_23 = arith.constant 0 : index
    %c0_24 = arith.constant 0 : index
    %36 = vector.load %arg7[%c0_23, %c0_24] : memref<1x128xf32, #tpu.memory_space<vmem>>, vector<1x128xf32>
    %37 = vector.broadcast %36 : vector<1x128xf32> to vector<32x128xf32>
    %38 = arith.addf %35, %37 : vector<32x128xf32>
    %39 = math.tanh %38 : vector<32x128xf32>
    %40 = vector.shape_cast %39 : vector<32x128xf32> to vector<2x16x128xf32>
    %c0_25 = arith.constant 0 : index
    %c0_26 = arith.constant 0 : index
    %c0_27 = arith.constant 0 : index
    %41 = vector.load %arg8[%c0_25, %c0_26, %c0_27] : memref<2x16x128xf32, #tpu.memory_space<vmem>>, vector<2x16x128xf32>
    tpu.vector_store %arg8[%c0_25, %c0_26, %c0_27], %40 {strides = array<i32>} : memref<2x16x128xf32, #tpu.memory_space<vmem>>, vector<2x16x128xf32>,
    return
  }
  func.func @transform_0(%arg0: i32) -> (i32, i32, i32) {
    %c0_i32 = arith.constant 0 : i32
    %c0_i32_0 = arith.constant 0 : i32
    %c0_i32_1 = arith.constant 0 : i32
    return %arg0, %c0_i32, %c0_i32_0 : i32, i32, i32
  }
  func.func @transform_1(%arg0: i32) -> (i32, i32, i32) {
    %c0_i32 = arith.constant 0 : i32
    %c0_i32_0 = arith.constant 0 : i32
    %c0_i32_1 = arith.constant 0 : i32
    return %arg0, %c0_i32, %c0_i32_0 : i32, i32, i32
  }
  func.func @transform_2(%arg0: i32) -> (i32, i32) {
    %c0_i32 = arith.constant 0 : i32
    %c0_i32_0 = arith.constant 0 : i32
    %c0_i32_1 = arith.constant 0 : i32
    return %c0_i32, %c0_i32_0 : i32, i32
  }
  func.func @transform_3(%arg0: i32) -> (i32, i32) {
    %c0_i32 = arith.constant 0 : i32
    %c0_i32_0 = arith.constant 0 : i32
    %c0_i32_1 = arith.constant 0 : i32
    return %c0_i32, %c0_i32_0 : i32, i32
  }
  func.func @transform_4(%arg0: i32) -> (i32, i32) {
    %c0_i32 = arith.constant 0 : i32
    %c0_i32_0 = arith.constant 0 : i32
    %c0_i32_1 = arith.constant 0 : i32
    return %c0_i32, %c0_i32_0 : i32, i32
  }
  func.func @transform_5(%arg0: i32) -> (i32, i32) {
    %c0_i32 = arith.constant 0 : i32
    %c0_i32_0 = arith.constant 0 : i32
    %c0_i32_1 = arith.constant 0 : i32
    return %c0_i32, %c0_i32_0 : i32, i32
  }
  func.func @transform_6(%arg0: i32) -> (i32, i32) {
    %c0_i32 = arith.constant 0 : i32
    %c0_i32_0 = arith.constant 0 : i32
    %c0_i32_1 = arith.constant 0 : i32
    return %c0_i32, %c0_i32_0 : i32, i32
  }
  func.func @transform_7(%arg0: i32) -> (i32, i32, i32) {
    %c0_i32 = arith.constant 0 : i32
    %c0_i32_0 = arith.constant 0 : i32
    %c0_i32_1 = arith.constant 0 : i32
    return %arg0, %c0_i32, %c0_i32_0 : i32, i32, i32
  }
  func.func @transform_8(%arg0: i32) -> (i32, i32, i32) {
    %c0_i32 = arith.constant 0 : i32
    %c0_i32_0 = arith.constant 0 : i32
    %c0_i32_1 = arith.constant 0 : i32
    return %arg0, %c0_i32, %c0_i32_0 : i32, i32, i32
  }
}

</mosaic_0001>

<bundles_post_ra>
// kernel: tpu_custom_call.1
= control target key start
LH: loop header
LB: loop body
LE: loop exit
PB: predicated region body
PF: predicated region fallthrough
CT: control target
= control target key end

     0   :  { %14 = vsyncpa [#allocation3], 0  ;;  %s1616_s0 = inlined_call_operand.hbm [shape: bf16[2,16,128], index: 0, kind: input, shape index: {}]   ;;  %s1617_s1 = inlined_call_operand.hbm [shape: bf16[2,128,128], index: 1, kind: input, shape index: {}]   ;;  %s1618_s2 = inlined_call_operand.hbm [shape: bf16[128,128], index: 2, kind: input, shape index: {}]   ;;  %s1619_s3 = inlined_call_operand.vmem [shape: f32[1,128], index: 3, kind: input, shape index: {}]   ;;  %s1620_s4 = inlined_call_operand.hbm [shape: bf16[128,128], index: 4, kind: input, shape index: {}]   ;;  %s1621_s5 = inlined_call_operand.hbm [shape: bf16[128,128], index: 5, kind: input, shape index: {}]   ;;  %s1622_s6 = inlined_call_operand.vmem [shape: f32[1,128], index: 6, kind: input, shape index: {}]   ;;  %s1623_s7 = inlined_call_operand.hbm [shape: f32[2,16,128], index: 7, kind: output, shape index: {0}]   ;;  %s1624_s8 = inlined_call_operand.hbm [shape: f32[2,16,128], index: 8, kind: output, shape index: {1}]  }
   0x1   :  { %15 = vsyncpa [#allocation6], 0 }
   0x2   :  { %16 = vsyncpa [#allocation9], 0 }
   0x3   :  { %17 = vsyncpa [#allocation4], 0 }
   0x4   :  { %18 = vsyncpa [#allocation13], 0  ;;  %s1357_s27 = smov [#allocation5]   ;;  %s1358_s29 = smov [#allocation8]  }
   0x5   :  { %s36_s28 = sshll.u32 %s1357_s27, 4  ;;  %s62_s30 = sshll.u32 %s1358_s29, 4  ;;  %s37_s28 = int_to_ptr.vmem [resolvable:$true] %s36_s28  ;;  %s1415_s30 = int_to_ptr.vmem [resolvable:$true] %s62_s30 }
   0x6   :  { %s1193_s11 = scalar_lea.hbm %s1617_s1, 2048 }
   0x7   :  { %p1194_p0 = scmp.ne.s32.totalorder %s1617_s1, %s1193_s11  ;;  %p1197_p1 = scmp.lt.u32.totalorder %s1193_s11, %s1617_s1 }
   0x9   :  { %p1199_p2 = pnand %p1197_p1, %p1194_p0 }
   0xb   :  { %1202 = shalt.err (!%p1199_p2)
}
   0xc   :  { %s1203_s16 = scalar_lea.vmem %s37_s28, 2048  ;;  %p1208_p4 = scmp.lt.s32.totalorder %s37_s28, %s37_s28 }
   0xd   :  { %p1204_p3 = scmp.ne.s32.totalorder %s37_s28, %s1203_s16  ;;  %p1209_p5 = scmp.lt.s32.totalorder %s1203_s16, %s1203_s16 }
   0xf   :  { %p1210_p6 = por %p1209_p5, %p1208_p4 }
  0x11   :  { %p1211_p7 = pnand %p1210_p6, %p1204_p3 }
  0x13   :  { %1214 = shalt.err (!%p1211_p7)
}
  0x14   :  { %s1359_s17 = smov 64   ;;  %s1360_s18 = smov 4  }
  0x15   :  { %42 = dma.hbm_to_vmem [thread:$0]  %s1617_s1, 2048, %s37_s28, [#allocation6], %s1359_s17, %s1359_s17, %s1360_s18  }
  0x16   :  { %s1215_s23 = scalar_lea.hbm %s1620_s4, 1024 }
  0x17   :  { %p1216_p8 = scmp.ne.s32.totalorder %s1620_s4, %s1215_s23  ;;  %p1219_p9 = scmp.lt.u32.totalorder %s1215_s23, %s1620_s4 }
  0x19   :  { %p1221_p10 = pnand %p1219_p9, %p1216_p8 }
  0x1b   :  { %1224 = shalt.err (!%p1221_p10)
}
  0x1c   :  { %s1225_s29 = scalar_lea.vmem %s1415_s30, 1024  ;;  %p1230_p12 = scmp.lt.s32.totalorder %s1415_s30, %s1415_s30 }
  0x1d   :  { %p1226_p11 = scmp.ne.s32.totalorder %s1415_s30, %s1225_s29  ;;  %p1231_p13 = scmp.lt.s32.totalorder %s1225_s29, %s1225_s29 }
  0x1f   :  { %p1232_p0 = por %p1231_p13, %p1230_p12 }
  0x21   :  { %p1233_p1 = pnand %p1232_p0, %p1226_p11 }
  0x23   :  { %1236 = shalt.err (!%p1233_p1)
}
  0x24   :  { %68 = dma.hbm_to_vmem [thread:$0]  %s1620_s4, 1024, %s1415_s30, [#allocation9], %s1359_s17, %s1359_s17, %s1360_s18  }
  0x25   :  { %s1361_s9 = smov [#allocation2]   ;;  %s1362_s11 = smov [#allocation7]  }
  0x26   :  { %s24_s10 = sshll.u32 %s1361_s9, 4  ;;  %s48_s12 = sshll.u32 %s1362_s11, 4  ;;  %s25_s10 = int_to_ptr.vmem [resolvable:$true] %s24_s10  ;;  %s1452_s12 = int_to_ptr.vmem [resolvable:$true] %s48_s12 }
  0x27   :  { %s1237_s15 = scalar_lea.hbm %s1616_s0, 256 }
  0x28   :  { %p1238_p2 = scmp.ne.s32.totalorder %s1616_s0, %s1237_s15  ;;  %p1241_p3 = scmp.lt.u32.totalorder %s1237_s15, %s1616_s0 }
  0x2a   :  { %p1243_p4 = pnand %p1241_p3, %p1238_p2 }
  0x2c   :  { %1246 = shalt.err (!%p1243_p4)
}
  0x2d   :  { %s1247_s4 = scalar_lea.vmem %s25_s10, 256  ;;  %p1252_p6 = scmp.lt.s32.totalorder %s25_s10, %s25_s10 }
  0x2e   :  { %p1248_p5 = scmp.ne.s32.totalorder %s25_s10, %s1247_s4  ;;  %p1253_p7 = scmp.lt.s32.totalorder %s1247_s4, %s1247_s4 }
  0x30   :  { %p1254_p8 = por %p1253_p7, %p1252_p6 }
  0x32   :  { %p1255_p9 = pnand %p1254_p8, %p1248_p5 }
  0x34   :  { %1258 = shalt.err (!%p1255_p9)
}
  0x35   :  { %30 = dma.hbm_to_vmem [thread:$0]  %s1616_s0, 256, %s25_s10, [#allocation3], %s1359_s17, %s1359_s17, %s1360_s18  }
  0x36   :  { %s1259_s25 = scalar_lea.hbm %s1618_s2, 1024 }
  0x37   :  { %p1260_p10 = scmp.ne.s32.totalorder %s1618_s2, %s1259_s25  ;;  %p1263_p11 = scmp.lt.u32.totalorder %s1259_s25, %s1618_s2 }
  0x39   :  { %p1265_p12 = pnand %p1263_p11, %p1260_p10 }
  0x3b   :  { %1268 = shalt.err (!%p1265_p12)
}
  0x3c   :  { %s1269_s28 = scalar_lea.vmem %s1452_s12, 1024  ;;  %p1274_p0 = scmp.lt.s32.totalorder %s1452_s12, %s1452_s12 }
  0x3d   :  { %p1270_p13 = scmp.ne.s32.totalorder %s1452_s12, %s1269_s28  ;;  %p1275_p1 = scmp.lt.s32.totalorder %s1269_s28, %s1269_s28 }
  0x3f   :  { %p1276_p2 = por %p1275_p1, %p1274_p0 }
  0x41   :  { %p1277_p3 = pnand %p1276_p2, %p1270_p13 }
  0x43   :  { %1280 = shalt.err (!%p1277_p3)
}
  0x44   :  { %54 = dma.hbm_to_vmem [thread:$0]  %s1618_s2, 1024, %s1452_s12, [#allocation6], %s1359_s17, %s1359_s17, %s1360_s18  }
  0x45   :  { %s1363_s10 = smov [#allocation10]   ;;  %s1281_s15 = scalar_lea.hbm %s1621_s5, 1024 }
  0x46   :  { %s74_s11 = sshll.u32 %s1363_s10, 4  ;;  %p1282_p4 = scmp.ne.s32.totalorder %s1621_s5, %s1281_s15  ;;  %s75_s11 = int_to_ptr.vmem [resolvable:$true] %s74_s11 }
  0x47   :  { %p1285_p5 = scmp.lt.u32.totalorder %s1281_s15, %s1621_s5 }
  0x49   :  { %p1287_p6 = pnand %p1285_p5, %p1282_p4 }
  0x4b   :  { %1290 = shalt.err (!%p1287_p6)
}
  0x4c   :  { %s1291_s4 = scalar_lea.vmem %s75_s11, 1024  ;;  %p1296_p8 = scmp.lt.s32.totalorder %s75_s11, %s75_s11 }
  0x4d   :  { %p1292_p7 = scmp.ne.s32.totalorder %s75_s11, %s1291_s4  ;;  %p1297_p9 = scmp.lt.s32.totalorder %s1291_s4, %s1291_s4 }
  0x4f   :  { %p1298_p10 = por %p1297_p9, %p1296_p8 }
  0x51   :  { %p1299_p11 = pnand %p1298_p10, %p1292_p7 }
  0x53   :  { %1302 = shalt.err (!%p1299_p11)
}
  0x54   :  { %80 = dma.hbm_to_vmem [thread:$0]  %s1621_s5, 1024, %s75_s11, [#allocation9], %s1359_s17, %s1359_s17, %s1360_s18  }
  0x55   :  { %1347 = dma.done.wait [#allocation3], 256  }
  0x56   :  { %1348 = vsyncadd [#allocation3], 4294967040 }
  0x57   :  { %1349 = dma.done.wait [#allocation6], 3072  }
  0x58   :  { %1350 = vsyncadd [#allocation6], 4294964224 }
  0x59   :  { %1351 = dma.done.wait [#allocation9], 2048  }
  0x5a   :  { %1352 = vsyncadd [#allocation9], 4294965248  ;;  %v1364_v0 = vmov 0.0   ;;  %v1127_v1 = vld [vmem:[#allocation7] sm:$0xff]   ;;  %v1128_v2 = vld [vmem:[#allocation7 + $0x8] sm:$0xff]   ;;  %vm1365_vm0 = vmmov 0   ;;  %v447_v38 = vlaneseq }
  0x5b   :  { %990 = vmatprep.subr.bf16.mxu1 %v1364_v0  ;;  %970 = vmatprep.subr.bf16.mxu0 %v1127_v1  ;;  %v1129_v3 = vld [vmem:[#allocation7 + $0x10] sm:$0xff]   ;;  %v1130_v4 = vld [vmem:[#allocation7 + $0x18] sm:$0xff]   ;;  %v1508_v6 = vld [vmem:[#allocation5] sm:$0xff]  }
  0x5c   :  { %971 = vmatpush3.bf16.msra.mxu0 %v1127_v1  ;;  %v1505_v5 = vld [vmem:[#allocation2] sm:$0xff]   ;;  %v1131_v7 = vld [vmem:[#allocation7 + $0x20] sm:$0xff]   ;;  %991 = vmatpush3.bf16.xpose.msra.mxu1 %v1508_v6  ;;  %v1132_v8 = vld [vmem:[#allocation7 + $0x28] sm:$0xff]   ;;  %v448_v39 = vand.u32 127, %v447_v38 }
  0x5d   :  { %972 = vmatprep.subr.bf16.mxu0 %v1128_v2  ;;  %986 = vmatprep.mubr.bf16.mxu0 %v1505_v5  ;;  %v1512_v9 = vld [vmem:[#allocation5 + $0x8] sm:$0xff]   ;;  %v1133_v10 = vld [vmem:[#allocation7 + $0x30] sm:$0xff]   ;;  %v1134_v11 = vld [vmem:[#allocation7 + $0x38] sm:$0xff]  }
  0x5e   :  { %992 = vmatprep.subr.bf16.mxu1 %v1364_v0  ;;  %v1516_v12 = vld [vmem:[#allocation5 + $0x10] sm:$0xff]   ;;  %v1518_v13 = vld [vmem:[#allocation2 + $0x8] sm:$0xff]   ;;  %v1137_v15 = vld [vmem:[#allocation5 + $0x40] sm:$0xff]   ;;  %1006 = vmatprep.mubr.msk.bf16.mxu1 %vm1365_vm0, %v1364_v0  ;;  %vm449_vm1 = vcmp.lt.s32.totalorder %v448_v39, 8 }
  0x5f   :  { %v1522_v14 = vld [vmem:[#allocation5 + $0x18] sm:$0xff]   ;;  %v1529_v16 = vld [vmem:[#allocation5 + $0x20] sm:$0xff]   ;;  %v1139_v17 = vld [vmem:[#allocation5 + $0x48] sm:$0xff]  }
  0x60   :  { %973 = vmatpush3.bf16.msra.mxu0 %v1128_v2  ;;  %v1534_v18 = vld [vmem:[#allocation5 + $0x28] sm:$0xff]   ;;  %v1141_v19 = vld [vmem:[#allocation5 + $0x50] sm:$0xff]   ;;  %v1143_v21 = vld [vmem:[#allocation5 + $0x58] sm:$0xff]  }
  0x61   :  { %974 = vmatprep.subr.bf16.mxu0 %v1129_v3  ;;  %v1539_v20 = vld [vmem:[#allocation5 + $0x30] sm:$0xff]   ;;  %v1145_v22 = vld [vmem:[#allocation5 + $0x60] sm:$0xff]   ;;  %v1147_v23 = vld [vmem:[#allocation5 + $0x68] sm:$0xff]  }
  0x62   :  { %v1149_v24 = vld [vmem:[#allocation5 + $0x70] sm:$0xff]   ;;  %v1151_v25 = vld [vmem:[#allocation5 + $0x78] sm:$0xff]  }
  0x63   :  { %v1152_v26 = vld [vmem:[#allocation5 + $0x38] sm:$0xff]   ;;  %v860_v28 = vld [vmem:[%s1619_s3] ss:$0 sm:$0xff]  ;;  %s1366_s3 = smov [#allocation12]  }
  0x64   :  { %975 = vmatpush3.bf16.msra.mxu0 %v1129_v3  ;;  %993 = vmatpush3.bf16.xpose.msra.mxu1 %v1512_v9  ;;  %s842_s18 = sshll.u32 %s1366_s3, 4  ;;  %s843_s18 = int_to_ptr.vmem [resolvable:$true] %s842_s18 }
  0x65   :  { %976 = vmatprep.subr.bf16.mxu0 %v1130_v4  ;;  %994 = vmatprep.subr.bf16.mxu1 %v1364_v0  ;;  %s1303_s30 = scalar_lea.vmem %s843_s18, 512  ;;  %p1308_p13 = scmp.lt.s32.totalorder %s843_s18, %s843_s18 }
  0x66   :  { %p1304_p12 = scmp.ne.s32.totalorder %s843_s18, %s1303_s30  ;;  %p1309_p0 = scmp.lt.s32.totalorder %s1303_s30, %s1303_s30 }
  0x68   :  { %977 = vmatpush3.bf16.msra.mxu0 %v1130_v4  ;;  %v1153_v4 = vld [vmem:[#allocation10] sm:$0xff]   ;;  %p1310_p1 = por %p1309_p0, %p1308_p13 }
  0x69   :  { %978 = vmatprep.subr.bf16.mxu0 %v1131_v7 }
  0x6a   :  { %p1311_p2 = pnand %p1310_p1, %p1304_p12 }
  0x6c   :  { %979 = vmatpush3.bf16.msra.mxu0 %v1131_v7  ;;  %995 = vmatpush3.bf16.xpose.msra.mxu1 %v1516_v12 }
  0x6d   :  { %980 = vmatprep.subr.bf16.mxu0 %v1132_v8  ;;  %996 = vmatprep.subr.bf16.mxu1 %v1364_v0 }
  0x70   :  { %981 = vmatpush3.bf16.msra.mxu0 %v1132_v8 }
  0x71   :  { %982 = vmatprep.subr.bf16.mxu0 %v1133_v10 }
  0x74   :  { %983 = vmatpush3.bf16.msra.mxu0 %v1133_v10  ;;  %997 = vmatpush3.bf16.xpose.msra.mxu1 %v1522_v14 }
  0x75   :  { %984 = vmatprep.subr.bf16.mxu0 %v1134_v11  ;;  %998 = vmatprep.subr.bf16.mxu1 %v1364_v0 }
  0x78   :  { %985 = vmatpush3.bf16.msra.mxu0 %v1134_v11 }
  0x79   :  { %1010 = vmatprep.subr.bf16.mxu0 %v1364_v0 }
  0x7b   :  { %987 = vmatmul.mubr.bf16.vlgmr.msra.gmra.mrb[0].mxu0 %v1518_v13 }
  0x7c   :  { %999 = vmatpush3.bf16.xpose.msra.mxu1 %v1529_v16  ;;  %1026 = vmatprep.mubr.msk.bf16.mxu0 %vm1365_vm0, %v1364_v0 }
  0x7d   :  { %1000 = vmatprep.subr.bf16.mxu1 %v1364_v0 }
  0x81   :  { %1011 = vmatpush3.bf16.xpose.msra.mxu0 %v1137_v15 }
  0x82   :  { %1012 = vmatprep.subr.bf16.mxu0 %v1364_v0 }
  0x84   :  { %1001 = vmatpush3.bf16.xpose.msra.mxu1 %v1534_v18 }
  0x85   :  { %1002 = vmatprep.subr.bf16.mxu1 %v1364_v0 }
  0x89   :  { %1013 = vmatpush3.bf16.xpose.msra.mxu0 %v1139_v17 }
  0x8a   :  { %1014 = vmatprep.subr.bf16.mxu0 %v1364_v0 }
  0x8c   :  { %1003 = vmatpush3.bf16.xpose.msra.mxu1 %v1539_v20 }
  0x8d   :  { %1004 = vmatprep.subr.bf16.mxu1 %v1364_v0 }
  0x91   :  { %1015 = vmatpush3.bf16.xpose.msra.mxu0 %v1141_v19 }
  0x92   :  { %1016 = vmatprep.subr.bf16.mxu0 %v1364_v0 }
  0x94   :  { %1005 = vmatpush3.bf16.xpose.msra.mxu1 %v1152_v26 }
  0x95   :  { %1030 = vmatprep.subr.bf16.mxu1 %v1364_v0 }
  0x99   :  { %1017 = vmatpush3.bf16.xpose.msra.mxu0 %v1143_v21 }
  0x9a   :  { %1018 = vmatprep.subr.bf16.mxu0 %v1364_v0 }
  0xa1   :  { %1019 = vmatpush3.bf16.xpose.msra.mxu0 %v1145_v22 }
  0xa2   :  { %1020 = vmatprep.subr.bf16.mxu0 %v1364_v0 }
  0xa9   :  { %1021 = vmatpush3.bf16.xpose.msra.mxu0 %v1147_v23 }
  0xaa   :  { %1022 = vmatprep.subr.bf16.mxu0 %v1364_v0 }
  0xb1   :  { %1023 = vmatpush3.bf16.xpose.msra.mxu0 %v1149_v24 }
  0xb2   :  { %1024 = vmatprep.subr.bf16.mxu0 %v1364_v0 }
  0xb9   :  { %1025 = vmatpush3.bf16.xpose.msra.mxu0 %v1151_v25 }
  0xba   :  { %1050 = vmatprep.subr.bf16.mxu0 %v1364_v0 }
 0x14e   :  { %v988_v27 = vpop.f32.mrb[0].mxu0 }
 0x14f   :  { %v252_v29 = vpop.f32.mrb[1].mxu0  ;;  %v261_v31 = vadd.f32 %v988_v27, %v860_v28  ;;  %v1161_v27 = vld [vmem:[#allocation8] sm:$0xff]  }
 0x150   :  { %v989_v30 = vpop.f32.mrb[2].mxu0  ;;  %v253_v34 = vadd.f32 %v860_v28, %v252_v29  ;;  %v1163_v29 = vld [vmem:[#allocation8 + $0x10] sm:$0xff]  }
 0x151   :  { %v264_v32 = vadd.f32 %v989_v30, %v860_v28  ;;  %v255_v33 = vpop.f32.mrb[3].mxu0  ;;  %v1164_v30 = vld [vmem:[#allocation8 + $0x18] sm:$0xff]  }
 0x152   :  { %v256_v35 = vadd.f32 %v860_v28, %v255_v33  ;;  %v1162_v28 = vld [vmem:[#allocation8 + $0x8] sm:$0xff]   ;;  %v1167_v33 = vld [vmem:[#allocation8 + $0x30] sm:$0xff]  }
 0x153   :  { %v268_v36 = vpack.c.bf16 %v264_v32, %v261_v31  ;;  %v1165_v31 = vld [vmem:[#allocation8 + $0x20] sm:$0xff]   ;;  %v1166_v32 = vld [vmem:[#allocation8 + $0x28] sm:$0xff]  }
 0x154   :  { %v267_v37 = vpack.c.bf16 %v256_v35, %v253_v34  ;;  %v1168_v34 = vld [vmem:[#allocation8 + $0x38] sm:$0xff]  }
 0x155   :  { %1027 = vmatmul.mubr.bf16.vlgmr.msra.gmra.mrb[4].mxu0 %v268_v36 }
 0x156   :  { %1007 = vmatmul.mubr.bf16.vlgmr.msra.gmra.mrb[0].mxu1 %v267_v37  ;;  %1051 = vmatpush3.bf16.msra.mxu0 %v1137_v15 }
 0x157   :  { %1031 = vmatpush3.bf16.msra.mxu1 %v1508_v6  ;;  %1052 = vmatprep.subr.bf16.mxu0 %v1364_v0 }
 0x158   :  { %1032 = vmatprep.subr.bf16.mxu1 %v1364_v0  ;;  %1046 = vmatprep.mubr.msk.bf16.mxu1 %vm1365_vm0, %v1364_v0 }
 0x159   :  { %1066 = vmatprep.mubr.msk.bf16.mxu0 %vm1365_vm0, %v1364_v0 }
 0x15a   :  { %1053 = vmatpush3.bf16.msra.mxu0 %v1139_v17 }
 0x15b   :  { %1033 = vmatpush3.bf16.msra.mxu1 %v1512_v9  ;;  %1054 = vmatprep.subr.bf16.mxu0 %v1364_v0 }
 0x15c   :  { %1034 = vmatprep.subr.bf16.mxu1 %v1364_v0 }
 0x15e   :  { %1055 = vmatpush3.bf16.msra.mxu0 %v1141_v19 }
 0x15f   :  { %1035 = vmatpush3.bf16.msra.mxu1 %v1516_v12  ;;  %1056 = vmatprep.subr.bf16.mxu0 %v1364_v0 }
 0x160   :  { %1036 = vmatprep.subr.bf16.mxu1 %v1364_v0 }
 0x162   :  { %1057 = vmatpush3.bf16.msra.mxu0 %v1143_v21 }
 0x163   :  { %1037 = vmatpush3.bf16.msra.mxu1 %v1522_v14  ;;  %1058 = vmatprep.subr.bf16.mxu0 %v1364_v0 }
 0x164   :  { %1038 = vmatprep.subr.bf16.mxu1 %v1364_v0 }
 0x166   :  { %1059 = vmatpush3.bf16.msra.mxu0 %v1145_v22  ;;  %v1155_v22 = vld [vmem:[#allocation10 + $0x10] sm:$0xff]  }
 0x167   :  { %1039 = vmatpush3.bf16.msra.mxu1 %v1529_v16  ;;  %1060 = vmatprep.subr.bf16.mxu0 %v1364_v0 }
 0x168   :  { %1040 = vmatprep.subr.bf16.mxu1 %v1364_v0 }
 0x16a   :  { %1061 = vmatpush3.bf16.msra.mxu0 %v1147_v23  ;;  %v1156_v23 = vld [vmem:[#allocation10 + $0x18] sm:$0xff]  }
 0x16b   :  { %1041 = vmatpush3.bf16.msra.mxu1 %v1534_v18  ;;  %1062 = vmatprep.subr.bf16.mxu0 %v1364_v0  ;;  %v1154_v18 = vld [vmem:[#allocation10 + $0x8] sm:$0xff]  }
 0x16c   :  { %1042 = vmatprep.subr.bf16.mxu1 %v1364_v0 }
 0x16e   :  { %1063 = vmatpush3.bf16.msra.mxu0 %v1149_v24  ;;  %v1157_v24 = vld [vmem:[#allocation10 + $0x20] sm:$0xff]  }
 0x16f   :  { %1043 = vmatpush3.bf16.msra.mxu1 %v1539_v20  ;;  %1064 = vmatprep.subr.bf16.mxu0 %v1364_v0 }
 0x170   :  { %1044 = vmatprep.subr.bf16.mxu1 %v1364_v0 }
 0x172   :  { %1065 = vmatpush3.bf16.msra.mxu0 %v1151_v25  ;;  %v1158_v25 = vld [vmem:[#allocation10 + $0x28] sm:$0xff]  }
 0x173   :  { %1045 = vmatpush3.bf16.msra.mxu1 %v1152_v26  ;;  %v1159_v26 = vld [vmem:[#allocation10 + $0x30] sm:$0xff]  }
 0x174   :  { %1070 = vmatprep.subr.bf16.mxu1 %v1153_v4 }
 0x228   :  { %v440_v40 = vpop.f32.mrb[4].mxu0 }
 0x229   :  { %v351_v41 = vpop.f32.mrb[0].mxu1  ;;  %v1028_v42 = vpop.f32.mrb[5].mxu0  ;;  %v452_v43 = vsel %vm449_vm1, %v440_v40, -1e+30 }
 0x22a   :  { %458 = vmax.xlane.f32.xlu1 %v452_v43  ;;  %v1008_v44 = vpop.f32.mrb[1].mxu1  ;;  %v443_v45 = vpop.f32.mrb[6].mxu0  ;;  %v450_v46 = vsel %vm449_vm1, %v351_v41, -1e+30 }
 0x22b   :  { %v1029_v47 = vpop.f32.mrb[7].mxu0  ;;  %454 = vmax.xlane.f32.xlu0 %v450_v46  ;;  %v354_v48 = vpop.f32.mrb[2].mxu1  ;;  %v453_v50 = vsel %vm449_vm1, %v443_v45, -1e+30 }
 0x22c   :  { %v1009_v49 = vpop.f32.mrb[3].mxu1  ;;  %v451_v51 = vsel %vm449_vm1, %v354_v48, -1e+30 }
 0x22e   :  { %460 = vmax.xlane.f32.xlu1 %v453_v50 }
 0x22f   :  { %456 = vmax.xlane.f32.xlu0 %v451_v51 }
 0x2b7   :  { %v459_v52 = vpop.xlane.xlu1 %458 }
 0x2b8   :  { %v464_v53 = vsub.f32 %v452_v43, %v459_v52  ;;  %v455_v54 = vpop.xlane.xlu0 %454 }
 0x2b9   :  { %v462_v55 = vsub.f32 %v450_v46, %v455_v54 }
 0x2ba   :  { %v470_v58 = vmul.f32 1.442695, %v464_v53 }
 0x2bb   :  { %v466_v56 = vmul.f32 1.442695, %v462_v55  ;;  %v461_v57 = vpop.xlane.xlu1 %460 }
 0x2bc   :  { %v457_v59 = vpop.xlane.xlu0 %456  ;;  %v465_v60 = vsub.f32 %v453_v50, %v461_v57 }
 0x2bd   :  { %1169 = vpow2.f32 %v466_v56  ;;  %v463_v61 = vsub.f32 %v451_v51, %v457_v59 }
 0x2be   :  { %1171 = vpow2.f32 %v470_v58  ;;  %v472_v63 = vmul.f32 1.442695, %v465_v60 }
 0x2bf   :  { %v468_v62 = vmul.f32 1.442695, %v463_v61 }
 0x2c1   :  { %1173 = vpow2.f32 %v468_v62 }
 0x2c2   :  { %1175 = vpow2.f32 %v472_v63 }
 0x2c7   :  { %v1170_v0 = vpop.eup %1169 }
 0x2c8   :  { %474 = vadd.xlane.f32.xlu0 %v1170_v0  ;;  %v1172_v1 = vpop.eup %1171 }
 0x2cb   :  { %v1174_v2 = vpop.eup %1173 }
 0x2cc   :  { %478 = vadd.xlane.f32.xlu0 %v1172_v1  ;;  %476 = vadd.xlane.f32.xlu1 %v1174_v2  ;;  %v1176_v3 = vpop.eup %1175 }
 0x2d0   :  { %480 = vadd.xlane.f32.xlu1 %v1176_v3 }
 0x355   :  { %v475_v6 = vpop.xlane.xlu0 %474 }
 0x356   :  { %1177 = vrcp.f32 %v475_v6 }
 0x359   :  { %v477_v7 = vpop.xlane.xlu1 %476  ;;  %v479_v8 = vpop.xlane.xlu0 %478 }
 0x35a   :  { %1179 = vrcp.f32 %v477_v7 }
 0x35b   :  { %1181 = vrcp.f32 %v479_v8 }
 0x35d   :  { %v481_v9 = vpop.xlane.xlu1 %480 }
 0x35e   :  { %1183 = vrcp.f32 %v481_v9 }
 0x360   :  { %v1178_v10 = vpop.eup %1177 }
 0x361   :  { %v486_v11 = vmul.f32 %v1178_v10, %v1170_v0 }
 0x363   :  { %490 = vst [vmem:[#allocation12] sm:$0xff] %v486_v11 }
 0x364   :  { %v1180_v12 = vpop.eup %1179 }
 0x365   :  { %v1182_v14 = vpop.eup %1181  ;;  %v487_v15 = vmul.f32 %v1180_v12, %v1174_v2 }
 0x366   :  { %v488_v16 = vmul.f32 %v1182_v14, %v1172_v1 }
 0x367   :  { %491 = vst [vmem:[#allocation12 + $0x8] sm:$0xff] %v487_v15  ;;  %v494_v17 = vpack.c.bf16 %v487_v15, %v486_v11 }
 0x368   :  { %v1184_v19 = vpop.eup %1183  ;;  %492 = vst [vmem:[#allocation12 + $0x10] sm:$0xff] %v488_v16 }
 0x369   :  { %1047 = vmatmul.mubr.bf16.vlgmr.msra.gmra.mrb[4].mxu1 %v494_v17  ;;  %v489_v20 = vmul.f32 %v1184_v19, %v1176_v3 }
 0x36a   :  { %1071 = vmatpush3.bf16.msra.mxu1 %v1153_v4  ;;  %1086 = vmatprep.mubr.bf16.mxu1 %v1505_v5  ;;  %v1160_v5 = vld [vmem:[#allocation10 + $0x38] sm:$0xff]  }
 0x36b   :  { %493 = vst [vmem:[#allocation12 + $0x18] sm:$0xff] %v489_v20  ;;  %v495_v21 = vpack.c.bf16 %v489_v20, %v488_v16  ;;  %1072 = vmatprep.subr.bf16.mxu1 %v1154_v18 }
 0x36d   :  { %1067 = vmatmul.mubr.bf16.vlgmr.msra.gmra.mrb[8].mxu0 %v495_v21 }
 0x36e   :  { %1073 = vmatpush3.bf16.msra.mxu1 %v1154_v18 }
 0x36f   :  { %1074 = vmatprep.subr.bf16.mxu1 %v1155_v22 }
 0x372   :  { %1075 = vmatpush3.bf16.msra.mxu1 %v1155_v22 }
 0x373   :  { %1076 = vmatprep.subr.bf16.mxu1 %v1156_v23 }
 0x376   :  { %1077 = vmatpush3.bf16.msra.mxu1 %v1156_v23 }
 0x377   :  { %1078 = vmatprep.subr.bf16.mxu1 %v1157_v24 }
 0x37a   :  { %1079 = vmatpush3.bf16.msra.mxu1 %v1157_v24 }
 0x37b   :  { %1080 = vmatprep.subr.bf16.mxu1 %v1158_v25 }
 0x37e   :  { %1081 = vmatpush3.bf16.msra.mxu1 %v1158_v25 }
 0x37f   :  { %1082 = vmatprep.subr.bf16.mxu1 %v1159_v26 }
 0x382   :  { %1083 = vmatpush3.bf16.msra.mxu1 %v1159_v26 }
 0x383   :  { %1084 = vmatprep.subr.bf16.mxu1 %v1160_v5 }
 0x386   :  { %1085 = vmatpush3.bf16.msra.mxu1 %v1160_v5 }
 0x387   :  { %1090 = vmatprep.subr.bf16.mxu1 %v1161_v27 }
 0x389   :  { %1087 = vmatmul.mubr.bf16.vlgmr.msra.gmra.mrb[8].mxu1 %v1518_v13 }
 0x38a   :  { %1091 = vmatpush3.bf16.msra.mxu1 %v1161_v27 }
 0x38b   :  { %1092 = vmatprep.subr.bf16.mxu1 %v1162_v28 }
 0x38e   :  { %1093 = vmatpush3.bf16.msra.mxu1 %v1162_v28 }
 0x38f   :  { %1094 = vmatprep.subr.bf16.mxu1 %v1163_v29 }
 0x392   :  { %1095 = vmatpush3.bf16.msra.mxu1 %v1163_v29 }
 0x393   :  { %1096 = vmatprep.subr.bf16.mxu1 %v1164_v30 }
 0x396   :  { %1097 = vmatpush3.bf16.msra.mxu1 %v1164_v30 }
 0x397   :  { %1098 = vmatprep.subr.bf16.mxu1 %v1165_v31 }
 0x39a   :  { %1099 = vmatpush3.bf16.msra.mxu1 %v1165_v31 }
 0x39b   :  { %1100 = vmatprep.subr.bf16.mxu1 %v1166_v32 }
 0x39e   :  { %1101 = vmatpush3.bf16.msra.mxu1 %v1166_v32 }
 0x39f   :  { %1102 = vmatprep.subr.bf16.mxu1 %v1167_v33 }
 0x3a2   :  { %1103 = vmatpush3.bf16.msra.mxu1 %v1167_v33 }
 0x3a3   :  { %1104 = vmatprep.subr.bf16.mxu1 %v1168_v34 }
 0x3a6   :  { %1105 = vmatpush3.bf16.msra.mxu1 %v1168_v34 }
 0x43c   :  { %v530_v13 = vpop.f32.mrb[4].mxu1 }
 0x43d   :  { %v1048_v35 = vpop.f32.mrb[5].mxu1 }
 0x43e   :  { %v533_v36 = vpop.f32.mrb[6].mxu1 }
 0x43f   :  { %v578_v37 = vpack.c.bf16 %v533_v36, %v530_v13  ;;  %v1049_v38 = vpop.f32.mrb[7].mxu1 }
 0x440   :  { %v571_v39 = vpop.f32.mrb[8].mxu0 }
 0x441   :  { %v1068_v40 = vpop.f32.mrb[9].mxu0  ;;  %1106 = vmatprep.mubr.bf16.mxu1 %v578_v37 }
 0x442   :  { %v574_v41 = vpop.f32.mrb[10].mxu0 }
 0x443   :  { %v579_v42 = vpack.c.bf16 %v574_v41, %v571_v39  ;;  %v1069_v43 = vpop.f32.mrb[11].mxu0 }
 0x445   :  { %1107 = vmatmul.mubr.bf16.vlgmr.msra.gmra.mrb[8].mxu1 %v579_v42 }
 0x446   :  { %1314 = shalt.err (!%p1311_p2)
}
 0x447   :  { %s1315_s24 = scalar_lea.hbm %s1624_s8, 512 }
 0x448   :  { %p1316_p3 = scmp.ne.s32.totalorder %s1624_s8, %s1315_s24  ;;  %p1319_p4 = scmp.lt.u32.totalorder %s1315_s24, %s1624_s8 }
 0x44a   :  { %p1321_p5 = pnand %p1319_p4, %p1316_p3 }
 0x44c   :  { %1324 = shalt.err (!%p1321_p5)
}
 0x44d   :  { %s1367_s1 = smov 128   ;;  %s1368_s28 = smov 8   ;;  %v903_v44 = vld [vmem:[%s1622_s6] ss:$0 sm:$0xff] }
 0x44e   :  { %848 = dma.vmem_to_hbm [thread:$0]  %s843_s18, 512, %s1624_s8, [#allocation13], %s1367_s1, %s1367_s1, %s1368_s28  }
 0x44f   :  { %s1369_s13 = smov [#allocation11]  }
 0x450   :  { %s830_s14 = sshll.u32 %s1369_s13, 4  ;;  %s831_s14 = int_to_ptr.vmem [resolvable:$true] %s830_s14 }
 0x451   :  { %s1325_s6 = scalar_lea.vmem %s831_s14, 512  ;;  %p1330_p7 = scmp.lt.s32.totalorder %s831_s14, %s831_s14 }
 0x452   :  { %p1326_p6 = scmp.ne.s32.totalorder %s831_s14, %s1325_s6  ;;  %p1331_p8 = scmp.lt.s32.totalorder %s1325_s6, %s1325_s6 }
 0x454   :  { %p1332_p9 = por %p1331_p8, %p1330_p7 }
 0x456   :  { %p1333_p10 = pnand %p1332_p9, %p1326_p6 }
 0x518   :  { %v1108_v45 = vpop.f32.mrb[8].mxu1 }
 0x519   :  { %v815_v46 = vadd.f32 %v1108_v45, %v903_v44  ;;  %v791_v47 = vpop.f32.mrb[9].mxu1 }
 0x51a   :  { %v813_v48 = vadd.f32 %v903_v44, %v791_v47  ;;  %v1109_v49 = vpop.f32.mrb[10].mxu1 }
 0x51b   :  { %1185 = vtanh.f32 %v815_v46  ;;  %v816_v50 = vadd.f32 %v1109_v49, %v903_v44  ;;  %v794_v51 = vpop.f32.mrb[11].mxu1 }
 0x51c   :  { %1187 = vtanh.f32 %v813_v48  ;;  %v814_v52 = vadd.f32 %v903_v44, %v794_v51 }
 0x51d   :  { %1189 = vtanh.f32 %v816_v50 }
 0x51e   :  { %1191 = vtanh.f32 %v814_v52 }
 0x525   :  { %v1186_v53 = vpop.eup %1185 }
 0x526   :  { %v1188_v54 = vpop.eup %1187  ;;  %823 = vst [vmem:[#allocation11 + $0x10] sm:$0xff] %v1186_v53 }
 0x527   :  { %v1190_v55 = vpop.eup %1189  ;;  %821 = vst [vmem:[#allocation11] sm:$0xff] %v1188_v54 }
 0x528   :  { %v1192_v56 = vpop.eup %1191  ;;  %824 = vst [vmem:[#allocation11 + $0x18] sm:$0xff] %v1190_v55 }
 0x529   :  { %822 = vst [vmem:[#allocation11 + $0x8] sm:$0xff] %v1192_v56 }
 0x52a   :  { %1336 = shalt.err (!%p1333_p10)
}
 0x52b   :  { %s1337_s16 = scalar_lea.hbm %s1623_s7, 512 }
 0x52c   :  { %p1338_p11 = scmp.ne.s32.totalorder %s1623_s7, %s1337_s16  ;;  %p1341_p12 = scmp.lt.u32.totalorder %s1337_s16, %s1623_s7 }
 0x52e   :  { %p1343_p13 = pnand %p1341_p12, %p1338_p11 }
 0x530   :  { %1346 = shalt.err (!%p1343_p13)
}
 0x531   :  { %836 = dma.vmem_to_hbm [thread:$0]  %s831_s14, 512, %s1623_s7, [#allocation4], %s1367_s1, %s1367_s1, %s1368_s28  }
 0x532   :  { %1353 = dma.done.wait [#allocation4], 512  }
 0x533   :  { %1354 = vsyncadd [#allocation4], 4294966784 }
 0x534   :  { %1355 = dma.done.wait [#allocation13], 512  }
 0x535   :  { %1356 = vsyncadd [#allocation13], 4294966784 }
 0x536   :  { %855 = vsyncpa [#allocation3], 1 }
 0x537   :  { %856 = vsyncpa [#allocation6], 1 }
 0x538   :  { %857 = vsyncpa [#allocation9], 1 }
 0x539   :  { %858 = vsyncpa [#allocation4], 1 }
 0x53a   :  { %859 = vsyncpa [#allocation13], 1 }

</bundles_post_ra>
